<compile_context>
chip_gen: v7x
topology: tpu7x:2x2x1
jax: 0.10.0
libtpu: 0.0.40
codegen_flags: <defaults>
</compile_context>

<pallas_src>
import jax
import jax.numpy as jnp
from jax.experimental import pallas as pl
from jax.experimental.pallas import tpu as pltpu


# ----------------------------------------------------------------------------- #
# Parameter construction (deterministic, Haar filter bank)
# ----------------------------------------------------------------------------- #
def haar_filters() -> jnp.ndarray:
    """Returns the 2x2 orthonormal Haar synthesis filter bank, shape (4, 2, 2)."""
    a = 0.5
    ll = jnp.array([[a, a], [a, a]], dtype=jnp.float32)
    lh = jnp.array([[a, -a], [a, -a]], dtype=jnp.float32)
    hl = jnp.array([[a, a], [-a, -a]], dtype=jnp.float32)
    hh = jnp.array([[a, -a], [-a, a]], dtype=jnp.float32)
    return jnp.stack([ll, lh, hl, hh], axis=0)  # (4, 2, 2)


# ----------------------------------------------------------------------------- #
# Pallas kernel: per (batch, row-tile) inverse wavelet-packet synthesis (VPU FMA)
# ----------------------------------------------------------------------------- #
def _inv_wavelet_kernel(w_ref, vl_ref, hf_ref, out_ref):
    # w_ref:   (K*K,) SMEM, w[m*K + k] = W[tree[k], p, q] with m = p*s + q.
    # vl_ref:  (1, TR, N)    VMEM, low-pass coefficients (channel 0).
    # hf_ref:  (1, C, TR, N) VMEM, high-frequency coefficient channels 1..C.
    # out_ref: (1, TR, K*N)  VMEM, band m of row-block written to columns [m*N, (m+1)*N).
    C = hf_ref.shape[1]
    K = C + 1

    # Coefficient planes (cast in-kernel so bf16 inputs stay bf16 over the DMA).
    planes = [vl_ref[0].astype(jnp.float32)]
    for c in range(C):
        planes.append(hf_ref[0, c].astype(jnp.float32))

    # Unrolled K-term FMA per sub-pixel band m = p*s + q (VPU work, no MXU).
    bands = []
    for m in range(K):
        acc = planes[0] * w_ref[m * K + 0]
        for k in range(1, K):
            acc = acc + planes[k] * w_ref[m * K + k]
        bands.append(acc)

    # One lane-dense (TR, K*N) store.
    out_ref[0] = jnp.concatenate(bands, axis=-1).astype(out_ref.dtype)


# ----------------------------------------------------------------------------- #
# Tiling helper: largest row tile that keeps double-buffered VMEM under budget
# ----------------------------------------------------------------------------- #
def _pick_tile_rows(N, K, budget_bytes=16 * 1024 * 1024):
    # per grid step (double buffered): (K input planes + K*N out columns) * f32.
    bytes_per_row = 2 * (2 * K) * N * 4
    max_tr = max(8, budget_bytes // max(1, bytes_per_row))
    if max_tr >= N:
        return N
    tr = (max_tr // 8) * 8
    while tr >= 8:
        if N % tr == 0:
            return tr
        tr -= 8
    return N


# ----------------------------------------------------------------------------- #
# Wrapper (== reconstruct_wav_packet.forward)
# ----------------------------------------------------------------------------- #
def reconstruct_wav_packet(very_low, hf, W, tree, L, tile_rows=None):
    """Reconstructs x_{j-1} (B, L, L) from x_j (B, N, N) and \bar x_j (B, C, N, N)."""
    B, N, _ = very_low.shape
    C = hf.shape[1]
    K = C + 1
    s = W.shape[-1]
    assert K == s * s, "number of packet channels must be s*s - 1"
    assert L == s * N, "output size L must equal s * N"
    assert hf.shape == (B, C, N, N)

    if tile_rows is None:
        tile_rows = _pick_tile_rows(N, K)
    assert N % tile_rows == 0 and (tile_rows % 8 == 0 or tile_rows == N)

    # (K, K) synthesis matrix, flattened for SMEM: w[m*K + k] = W[tree[k], p, q].
    w_mat = W[tree].reshape(K, K).T               # (sub-pixel m, channel k)
    w_flat = w_mat.reshape(K * K).astype(jnp.float32)

    out_dtype = jnp.result_type(very_low.dtype, hf.dtype)
    grid = (B, N // tile_rows)

    itemsize = jnp.dtype(out_dtype).itemsize
    bytes_accessed = int(
        very_low.size * very_low.dtype.itemsize
        + hf.size * hf.dtype.itemsize
        + B * N * K * N * itemsize
        + w_flat.size * 4
    )
    flops = int(2 * K * B * L * L)

    bands = pl.pallas_call(
        _inv_wavelet_kernel,
        out_shape=jax.ShapeDtypeStruct((B, N, K * N), out_dtype),
        grid=grid,
        in_specs=[
            pl.BlockSpec(memory_space=pltpu.MemorySpace.SMEM),              # weights
            pl.BlockSpec((1, tile_rows, N), lambda b, t: (b, t, 0)),        # very_low
            pl.BlockSpec((1, C, tile_rows, N), lambda b, t: (b, 0, t, 0)),  # hf
        ],
        out_specs=pl.BlockSpec((1, tile_rows, K * N), lambda b, t: (b, t, 0)),
        compiler_params=pltpu.CompilerParams(
            dimension_semantics=("parallel", "parallel"),
            vmem_limit_bytes=32 * 1024 * 1024,
        ),
        cost_estimate=pl.CostEstimate(
            flops=flops, transcendentals=0, bytes_accessed=bytes_accessed
        ),
    )(w_flat, very_low, hf)

    # Remaining depth-to-space: only the intra-row (q, j) -> (j, q) lane interleave
    # (see TODO at top); the surrounding reshapes are free (contiguous).
    out = (
        bands.reshape(B, N, s, s, N)        # (b, i, p, q, j)
        .transpose(0, 1, 2, 4, 3)           # (b, i, p, j, q)
        .reshape(B, L, L)
    )
    return out


# ----------------------------------------------------------------------------- #
# Pure-JAX reference (for verification only)
# ----------------------------------------------------------------------------- #
def _reference(very_low, hf, W, tree, L):
    B, N, _ = very_low.shape
    s = W.shape[-1]
    coeff = jnp.concatenate([very_low[:, None, :, :], hf], axis=1)  # (B, K, N, N)
    wp = W[tree]                                                    # (K, s, s)
    out = jnp.einsum("bkij,kpq->bipjq", coeff, wp)                  # (B, N, s, N, s)
    return out.reshape(B, L, L)


if __name__ == "__main__":
    key = jax.random.PRNGKey(0)
    B, N, s = 2, 64, 2
    K = s * s
    C = K - 1
    L = s * N

    k1, k2 = jax.random.split(key)
    very_low = jax.random.normal(k1, (B, N, N), dtype=jnp.float32)   # x_j
    hf = jax.random.normal(k2, (B, C, N, N), dtype=jnp.float32)      # \bar x_j (NCHW)

    W = haar_filters()                      # (4, 2, 2) synthesis filter bank
    tree = jnp.arange(K, dtype=jnp.int32)   # full single-level packet ordering

    # tile_rows=32 -> grid (B, 2): exercises the spatial tiling / pipelining path.
    out = reconstruct_wav_packet(very_low, hf, W, tree, L, tile_rows=32)
    out = jax.block_until_ready(out)

    ref = _reference(very_low, hf, W, tree, L)
    assert out.shape == (B, L, L), out.shape
    assert out.dtype == jnp.float32
    assert jnp.allclose(out, ref, atol=1e-5, rtol=1e-5), float(jnp.abs(out - ref).max())

    print("KERNEL_OK")
</pallas_src>

<mosaic_0001>
module attributes {stable_mosaic.version = 11 : i64} {
  func.func @_inv_wavelet_kernel(%arg0: i32, %arg1: i32, %arg2: memref<16xf32, #tpu.memory_space<smem>>, %arg3: memref<1x32x64xf32, #tpu.memory_space<vmem>>, %arg4: memref<1x3x32x64xf32, #tpu.memory_space<vmem>>, %arg5: memref<1x32x256xf32, #tpu.memory_space<vmem>>) attributes {dimension_semantics = [#tpu.dimension_semantics<parallel>, #tpu.dimension_semantics<parallel>], iteration_bounds = array<i64: 2, 2>, scalar_prefetch = 0 : i64, scratch_operands = 0 : i64, tpu.core_type = #tpu.core_type<tc>, window_params = [{transform_indices = @transform_0, window_bounds = array<i64: 16>}, {transform_indices = @transform_1, window_bounds = array<i64: 1, 32, 64>}, {transform_indices = @transform_2, window_bounds = array<i64: 1, 3, 32, 64>}, {transform_indices = @transform_3, window_bounds = array<i64: 1, 32, 256>}]} {
    %c0 = arith.constant 0 : index
    %c0_0 = arith.constant 0 : index
    %c0_1 = arith.constant 0 : index
    %0 = vector.load %arg3[%c0, %c0_0, %c0_1] : memref<1x32x64xf32, #tpu.memory_space<vmem>>, vector<1x32x64xf32>
    %1 = vector.shape_cast %0 : vector<1x32x64xf32> to vector<32x64xf32>
    %c0_2 = arith.constant 0 : index
    %c0_3 = arith.constant 0 : index
    %c0_4 = arith.constant 0 : index
    %c0_5 = arith.constant 0 : index
    %2 = vector.load %arg4[%c0_2, %c0_3, %c0_4, %c0_5] : memref<1x3x32x64xf32, #tpu.memory_space<vmem>>, vector<1x1x32x64xf32>
    %3 = vector.shape_cast %2 : vector<1x1x32x64xf32> to vector<32x64xf32>
    %c0_6 = arith.constant 0 : index
    %c1 = arith.constant 1 : index
    %c0_7 = arith.constant 0 : index
    %c0_8 = arith.constant 0 : index
    %4 = vector.load %arg4[%c0_6, %c1, %c0_7, %c0_8] : memref<1x3x32x64xf32, #tpu.memory_space<vmem>>, vector<1x1x32x64xf32>
    %5 = vector.shape_cast %4 : vector<1x1x32x64xf32> to vector<32x64xf32>
    %c0_9 = arith.constant 0 : index
    %c2 = arith.constant 2 : index
    %c0_10 = arith.constant 0 : index
    %c0_11 = arith.constant 0 : index
    %6 = vector.load %arg4[%c0_9, %c2, %c0_10, %c0_11] : memref<1x3x32x64xf32, #tpu.memory_space<vmem>>, vector<1x1x32x64xf32>
    %7 = vector.shape_cast %6 : vector<1x1x32x64xf32> to vector<32x64xf32>
    %c0_12 = arith.constant 0 : index
    %8 = memref.load %arg2[%c0_12] : memref<16xf32, #tpu.memory_space<smem>>
    %9 = vector.broadcast %8 : f32 to vector<32x64xf32>
    %10 = arith.mulf %1, %9 : vector<32x64xf32>
    %c1_13 = arith.constant 1 : index
    %11 = memref.load %arg2[%c1_13] : memref<16xf32, #tpu.memory_space<smem>>
    %12 = vector.broadcast %11 : f32 to vector<32x64xf32>
    %13 = arith.mulf %3, %12 : vector<32x64xf32>
    %14 = arith.addf %10, %13 : vector<32x64xf32>
    %c2_14 = arith.constant 2 : index
    %15 = memref.load %arg2[%c2_14] : memref<16xf32, #tpu.memory_space<smem>>
    %16 = vector.broadcast %15 : f32 to vector<32x64xf32>
    %17 = arith.mulf %5, %16 : vector<32x64xf32>
    %18 = arith.addf %14, %17 : vector<32x64xf32>
    %c3 = arith.constant 3 : index
    %19 = memref.load %arg2[%c3] : memref<16xf32, #tpu.memory_space<smem>>
    %20 = vector.broadcast %19 : f32 to vector<32x64xf32>
    %21 = arith.mulf %7, %20 : vector<32x64xf32>
    %22 = arith.addf %18, %21 : vector<32x64xf32>
    %c4 = arith.constant 4 : index
    %23 = memref.load %arg2[%c4] : memref<16xf32, #tpu.memory_space<smem>>
    %24 = vector.broadcast %23 : f32 to vector<32x64xf32>
    %25 = arith.mulf %1, %24 : vector<32x64xf32>
    %c5 = arith.constant 5 : index
    %26 = memref.load %arg2[%c5] : memref<16xf32, #tpu.memory_space<smem>>
    %27 = vector.broadcast %26 : f32 to vector<32x64xf32>
    %28 = arith.mulf %3, %27 : vector<32x64xf32>
    %29 = arith.addf %25, %28 : vector<32x64xf32>
    %c6 = arith.constant 6 : index
    %30 = memref.load %arg2[%c6] : memref<16xf32, #tpu.memory_space<smem>>
    %31 = vector.broadcast %30 : f32 to vector<32x64xf32>
    %32 = arith.mulf %5, %31 : vector<32x64xf32>
    %33 = arith.addf %29, %32 : vector<32x64xf32>
    %c7 = arith.constant 7 : index
    %34 = memref.load %arg2[%c7] : memref<16xf32, #tpu.memory_space<smem>>
    %35 = vector.broadcast %34 : f32 to vector<32x64xf32>
    %36 = arith.mulf %7, %35 : vector<32x64xf32>
    %37 = arith.addf %33, %36 : vector<32x64xf32>
    %c8 = arith.constant 8 : index
    %38 = memref.load %arg2[%c8] : memref<16xf32, #tpu.memory_space<smem>>
    %39 = vector.broadcast %38 : f32 to vector<32x64xf32>
    %40 = arith.mulf %1, %39 : vector<32x64xf32>
    %c9 = arith.constant 9 : index
    %41 = memref.load %arg2[%c9] : memref<16xf32, #tpu.memory_space<smem>>
    %42 = vector.broadcast %41 : f32 to vector<32x64xf32>
    %43 = arith.mulf %3, %42 : vector<32x64xf32>
    %44 = arith.addf %40, %43 : vector<32x64xf32>
    %c10 = arith.constant 10 : index
    %45 = memref.load %arg2[%c10] : memref<16xf32, #tpu.memory_space<smem>>
    %46 = vector.broadcast %45 : f32 to vector<32x64xf32>
    %47 = arith.mulf %5, %46 : vector<32x64xf32>
    %48 = arith.addf %44, %47 : vector<32x64xf32>
    %c11 = arith.constant 11 : index
    %49 = memref.load %arg2[%c11] : memref<16xf32, #tpu.memory_space<smem>>
    %50 = vector.broadcast %49 : f32 to vector<32x64xf32>
    %51 = arith.mulf %7, %50 : vector<32x64xf32>
    %52 = arith.addf %48, %51 : vector<32x64xf32>
    %c12 = arith.constant 12 : index
    %53 = memref.load %arg2[%c12] : memref<16xf32, #tpu.memory_space<smem>>
    %54 = vector.broadcast %53 : f32 to vector<32x64xf32>
    %55 = arith.mulf %1, %54 : vector<32x64xf32>
    %c13 = arith.constant 13 : index
    %56 = memref.load %arg2[%c13] : memref<16xf32, #tpu.memory_space<smem>>
    %57 = vector.broadcast %56 : f32 to vector<32x64xf32>
    %58 = arith.mulf %3, %57 : vector<32x64xf32>
    %59 = arith.addf %55, %58 : vector<32x64xf32>
    %c14 = arith.constant 14 : index
    %60 = memref.load %arg2[%c14] : memref<16xf32, #tpu.memory_space<smem>>
    %61 = vector.broadcast %60 : f32 to vector<32x64xf32>
    %62 = arith.mulf %5, %61 : vector<32x64xf32>
    %63 = arith.addf %59, %62 : vector<32x64xf32>
    %c15 = arith.constant 15 : index
    %64 = memref.load %arg2[%c15] : memref<16xf32, #tpu.memory_space<smem>>
    %65 = vector.broadcast %64 : f32 to vector<32x64xf32>
    %66 = arith.mulf %7, %65 : vector<32x64xf32>
    %67 = arith.addf %63, %66 : vector<32x64xf32>
    %68 = tpu.concatenate %22, %37, %52, %67 in 1 : vector<32x64xf32>, vector<32x64xf32>, vector<32x64xf32>, vector<32x64xf32> -> vector<32x256xf32>
    %c0_15 = arith.constant 0 : index
    %c0_16 = arith.constant 0 : index
    %c0_17 = arith.constant 0 : index
    %69 = vector.load %arg5[%c0_15, %c0_16, %c0_17] : memref<1x32x256xf32, #tpu.memory_space<vmem>>, vector<1x32x256xf32>
    %70 = vector.shape_cast %69 : vector<1x32x256xf32> to vector<32x256xf32>
    %71 = vector.shape_cast %68 : vector<32x256xf32> to vector<1x32x256xf32>
    tpu.vector_store %arg5[%c0_15, %c0_16, %c0_17], %71 {strides = array<i32>} : memref<1x32x256xf32, #tpu.memory_space<vmem>>, vector<1x32x256xf32>,
    return
  }
  func.func @transform_0(%arg0: i32, %arg1: i32) -> i32 {
    %c0_i32 = arith.constant 0 : i32
    %c0_i32_0 = arith.constant 0 : i32
    return %c0_i32 : i32
  }
  func.func @transform_1(%arg0: i32, %arg1: i32) -> (i32, i32, i32) {
    %c0_i32 = arith.constant 0 : i32
    %c0_i32_0 = arith.constant 0 : i32
    return %arg0, %arg1, %c0_i32 : i32, i32, i32
  }
  func.func @transform_2(%arg0: i32, %arg1: i32) -> (i32, i32, i32, i32) {
    %c0_i32 = arith.constant 0 : i32
    %c0_i32_0 = arith.constant 0 : i32
    %c0_i32_1 = arith.constant 0 : i32
    return %arg0, %c0_i32, %arg1, %c0_i32_0 : i32, i32, i32, i32
  }
  func.func @transform_3(%arg0: i32, %arg1: i32) -> (i32, i32, i32) {
    %c0_i32 = arith.constant 0 : i32
    %c0_i32_0 = arith.constant 0 : i32
    return %arg0, %arg1, %c0_i32 : i32, i32, i32
  }
}

</mosaic_0001>

<bundles_post_ra>
// kernel: tpu_custom_call.1
= control target key start
LH: loop header
LB: loop body
LE: loop exit
PB: predicated region body
PF: predicated region fallthrough
CT: control target
= control target key end

     0   :  { %s1406_s0 = inlined_call_operand.hbm [shape: f32[16], index: 0, kind: input, shape index: {}]   ;;  %s1407_s1 = inlined_call_operand.hbm [shape: f32[2,64,64], index: 1, kind: input, shape index: {}]   ;;  %s1408_s2 = inlined_call_operand.hbm [shape: f32[2,3,64,64], index: 2, kind: input, shape index: {}]   ;;  %s1409_s3 = inlined_call_operand.hbm [shape: f32[2,64,256], index: 3, kind: output, shape index: {}]  }
   0x1   :  { %1418 = sst [smem:[#allocation20_spill]] %s1406_s0 }
   0x2   :  { %1419 = sst [smem:[#allocation21_spill]] %s1407_s1 }
   0x3   :  { %8 = vsyncpa [#allocation5], 0 }
   0x4   :  { %9 = vsyncpa [#allocation3], 0 }
   0x5   :  { %11 = vsyncpa [#allocation3 + $0x1], 0 }
   0x6   :  { %12 = vsyncpa [#allocation8], 0 }
   0x7   :  { %14 = vsyncpa [#allocation8 + $0x1], 0 }
   0x8   :  { %15 = vsyncpa [#allocation4], 0 }
   0x9   :  { %17 = vsyncpa [#allocation4 + $0x1], 0  ;;  %s985_s12 = smov 0   ;;  %s987_s13 = smov 0  }
   0xa   :  { %s989_s14 = smov 0   ;;  %s991_s15 = smov 0  }
   0xb   :  { %s993_s16 = smov 0   ;;  %s995_s17 = smov 0  }
   0xc   :  { %s997_s18 = smov 0   ;;  %s999_s19 = smov 0  }
   0xd LB: > { %1420 = sst [smem:[#allocation17_spill]] %s945_s18  ;;  %s647_s20 = sadd.s32 4294967295, %s949_s19   ;;  %s949_s19 = sphi %s999_s19, %s23_s19   ;;  %s945_s18 = sphi %s997_s18, %s1438_s18   ;;  %s941_s17 = sphi %s995_s17, %s1443_s17   ;;  %s937_s16 = sphi %s993_s16, %s1436_s16   ;;  %s933_s15 = sphi %s991_s15, %s1442_s15   ;;  %s929_s14 = sphi %s989_s14, %s1441_s14   ;;  %s925_s13 = sphi %s987_s13, %s1440_s13   ;;  %s921_s12 = sphi %s985_s12, %s1439_s12  }
   0xe   : > { %s648_s21 = sadd.s32 4294967294, %s949_s19   ;;  %s32_s22 = sadd.s32 1, %s941_s17 }
   0xf   : > { %s35_s23 = sadd.s32 1, %s945_s18  ;;  %p33_p0 = scmp.ge.s32.totalorder %s32_s22, 2 }
  0x10   : > { %s65_s24 = sadd.s32 1, %s929_s14  ;;  %p72_p1 = scmp.ne.s32.totalorder %s929_s14, %s925_s13 }
  0x11   : > { %p73_p2 = scmp.eq.s32.totalorder %s949_s19, 0  ;;  %s1445_s22 = smov (%p33_p0, %s32_s22), 0 }
  0x12   : > { %1421 = sst [smem:[#allocation18_spill]] %s1445_s22  ;;  %s1447_s23 = smov (!%p33_p0, %s35_s23), %s945_s18 }
  0x13   : > { %s61_s25 = ssub.s32 %s941_s17, %s1445_s22  ;;  %p1038_p3 = por %p73_p2, %p72_p1 }
  0x14   : > { %p37_p4 = scmp.ge.s32.totalorder %s1447_s23, 2  ;;  %p78_p5 = scmp.ne.s32.totalorder %s925_s13, %s921_s12 }
  0x15   : > { %p1044_p6 = scmp.eq.s32.totalorder %s647_s20, 0  ;;  %p132_p7 = scmp.eq.s32.totalorder %s647_s20, 3 }
  0x16   : > { %s1449_s23 = smov (%p37_p4, %s1447_s23), 0  ;;  %p138_p10 = scmp.eq.s32.totalorder %s648_s21, 3 }
  0x17   : > { %s1423_s27 = scalar_select %p1044_p6, 1, 0 }
  0x18   : > { %1424 = sst [smem:[#allocation19_spill]] %s1449_s23  ;;  %p1052_p8 = por %p1044_p6, %p78_p5 }
  0x19   : > { %p1056_p9 = por %p132_p7, %p72_p1  ;;  %s60_s30 = ssub.s32 %s945_s18, %s1449_s23 }
  0x1a   : > { %s1425_s28 = scalar_select %p1052_p8, 1, 0 }
  0x1b   : > { %s1426_s29 = scalar_select %p1056_p9, 1, 0 }
  0x1c   : > { %s62_s4 = sor.u32 %s61_s25, %s60_s30  ;;  %p649_p11 = scmp.ge.s32.totalorder %s949_s19, 1 }
  0x1d   : > { %p63_p12 = scmp.eq.s32.totalorder %s62_s4, 0  ;;  %p1063_p13 = por %p138_p10, %p78_p5 }
  0x1e   : > { %p145_p0 = scmp.lt.s32.totalorder %s949_s19, 5  ;;  %s1429_s0 = sld [smem:[#allocation20_spill]] }
  0x1f   : > { %s1427_s5 = scalar_select %p1063_p13, 1, 0 }
  0x20   : > { %s1069_s6 = scalar_select %p63_p12, %s929_s14, %s65_s24  }
  0x21   : > { %p1071_p2 = pnand %p649_p11, %p145_p0 }
  0x23   : > { %p715_p1 = pneg %p1071_p2 }
  0x24   : > { %s802_s10 = scalar_lea.hbm %s1429_s0, 16 }
  0x25   : > { %p716_p4 = pnand %p715_p1, %p1044_p6  ;;  %p803_p5 = scmp.ne.s32.totalorder %s1429_s0, %s802_s10 }
  0x26   : > { %p809_p11 = scmp.lt.u32.totalorder %s802_s10, %s1429_s0 }
  0x27   : > { %p804_p7 = pneg %p716_p4 }
  0x29   : > { %p805_p10 = pnand %p804_p7, %p803_p5 }
  0x2b   : > { %p806_p12 = pneg %p805_p10 }
  0x2d   : > { %p811_p0 = pnand %p809_p11, %p806_p12 }
  0x2f   : > { %814 = shalt.err (!%p811_p0)
}
  0x30   : > { %s951_s25 = smov [#allocation2]   ;;  %p651_p1 = scmp.ge.s32.totalorder %s949_s19, 4 }
  0x31   : > { %718 = dma.hbm_to_smem (!%p716_p4), %s1429_s0, 16, %s951_s25, [#allocation5]  }
  0x32   : > { %163 = sbr.rel (%p651_p1) target bundleno = 99 (0x63), region = 20  ;;  %s1093_s8 = sand.u32 (!%p651_p1), 1, %s929_s14  }
  0x33   : > { %s1412_s9 = sshll.u32 (!%p651_p1), %s941_s17, 2  ;;  %s652_s10 = sshll.u32 (!%p651_p1), %s1093_s8, 5 }
  0x34   : > { %s654_s11 = sshll.u32 (!%p651_p1), %s945_s18, 3  ;;  %s171_s21 = scalar_lea.vmem (!%p651_p1), [#allocation6], %s652_s10 }
  0x35   : > { %s177_s20 = sadd.s32 (!%p651_p1), %s654_s11, %s1412_s9  ;;  %s180_s24 = sshll.u32 (!%p651_p1), %s171_s21, 4  ;;  %s1100_s24 = int_to_ptr.vmem [resolvable:$true] %s180_s24 }
  0x36   : > { %s655_s25 = sshll.u32 (!%p651_p1), %s177_s20, 7  ;;  %s1430_s1 = sld [smem:[#allocation21_spill]] (!%p651_p1) }
  0x37   : > { %s168_s23 = scalar_lea.sflag (!%p651_p1), [#allocation3], %s1093_s8 }
  0x3c   : > { %s1105_s0 = scalar_lea.hbm %s1430_s1, %s655_s25  ;;  %s819_s20 = scalar_lea.hbm %s1430_s1, 2048 }
  0x3d   : > { %s815_s22 = scalar_lea.hbm %s1105_s0, 512  ;;  %p820_p10 = scmp.lt.u32.totalorder %s1105_s0, %s1430_s1 }
  0x3e   : > { %p816_p4 = scmp.ne.s32.totalorder %s1105_s0, %s815_s22  ;;  %p821_p12 = scmp.lt.u32.totalorder %s819_s20, %s815_s22 }
  0x3f   : > { %p823_p0 = scmp.lt.u32.totalorder %s815_s22, %s1105_s0 }
  0x40   : > { %p817_p5 = pnand %p816_p4, %p1038_p3  ;;  %p822_p11 = por %p821_p12, %p820_p10 }
  0x42   : > { %p818_p7 = pneg %p817_p5  ;;  %p824_p1 = por %p823_p0, %p822_p11 }
  0x44   : > { %p825_p13 = pnand %p824_p1, %p818_p7 }
  0x46   : > { %828 = shalt.err (!%p825_p13)
}
  0x47   : > { %s829_s25 = scalar_lea.vmem %s1100_s24, 512  ;;  %s952_s30 = smov [#allocation6]  }
  0x48   : > { %p830_p4 = scmp.ne.s32.totalorder %s1100_s24, %s829_s25  ;;  %s833_s4 = sshll.u32 %s952_s30, 4  ;;  %s834_s4 = int_to_ptr.vmem [resolvable:$false] %s833_s4 }
  0x49   : > { %s835_s9 = scalar_lea.vmem %s834_s4, 1024  ;;  %p836_p8 = scmp.lt.s32.totalorder %s1100_s24, %s834_s4 }
  0x4a   : > { %p831_p5 = pnand %p830_p4, %p1038_p3  ;;  %p837_p6 = scmp.lt.s32.totalorder %s835_s9, %s829_s25 }
  0x4c   : > { %p832_p9 = pneg %p831_p5  ;;  %p838_p10 = por %p837_p6, %p836_p8 }
  0x4e   : > { %p839_p12 = pnand %p838_p10, %p832_p9 }
  0x50   : > { %842 = shalt.err (!%p839_p12)
}
  0x51   : > { %s953_s22 = smov 128   ;;  %s954_s10 = smov 8  }
  0x52   : > { %700 = dma.hbm_to_vmem [thread:$0]  (%p1038_p3), %s1105_s0, 512, %s1100_s24, %s168_s23, %s953_s22, %s953_s22, %s954_s10  }
  0x53   : > { %s695_s11 = smul.u32 96, %s1093_s8  ;;  %s955_s21 = smov 1024  }
  0x54   : > { %s696_s20 = smul.u32 24, %s945_s18  ;;  %702 = sst [smem:[#allocation11]] (%p1038_p3), %s955_s21 }
  0x55   : > { %s1431_s25 = sshll.u32 %s941_s17, 2  ;;  %s194_s4 = scalar_lea.vmem [#allocation7], %s695_s11 }
  0x56   : > { %s200_s30 = sadd.s32 %s696_s20, %s1431_s25  ;;  %s215_s9 = sshll.u32 %s194_s4, 4  ;;  %s216_s9 = int_to_ptr.vmem [resolvable:$true] %s215_s9 }
  0x57   : > { %s701_s0 = scalar_select %p1038_p3, [#allocation0], [#allocation12] }
  0x58   : > { %s956_s23 = smov 512   ;;  %s957_s22 = smov 4  }
  0x59   : > { %703 = sst [smem:[#allocation11 + $0x1]] (%p1038_p3), %s956_s23  ;;  %s657_s10 = sshll.u32 %s200_s30, 7 }
  0x5a   : > { %s207_s24 = sld [smem:[%s701_s0]]   ;;  %s958_s1 = smov 128  }
  0x5b   : > { %704 = sst [smem:[#allocation11 + $0x2]] (%p1038_p3), %s957_s22  ;;  %s959_s11 = smov 8  }
  0x5c   : > { %705 = sst [smem:[#allocation11 + $0x3]] (%p1038_p3), %s958_s1  ;;  %s202_s25 = scalar_lea.hbm %s1408_s2, %s657_s10 }
  0x5d   : > { %706 = sst [smem:[#allocation11 + $0x4]] (%p1038_p3), %s958_s1  ;;  %s191_s0 = scalar_lea.sflag [#allocation8], %s1093_s8 }
  0x5e   : > { %707 = sst [smem:[#allocation11 + $0x5]] (%p1038_p3), %s959_s11  ;;  %s960_s18 = smov [#allocation10]  }
  0x60   : > { %s658_s4 = sshll.u32 %s207_s24, 26 }
  0x61   : > { %s659_s23 = sadd.s32 134217728, %s658_s4 }
  0x62   : > { %708 = dma.general (%p1038_p3), %s202_s25, 1536, %s216_s9, %s191_s0, %s960_s18, [#allocation11], %s659_s23, 0  }
  0x63 PF: > { %240 = sbr.rel (%p1071_p2) target bundleno = 277 (0x115), region = 32  ;;  %p1432_p6 = scmp.ne.s32.totalorder (!%p1071_p2), %s1423_s27, 0 }
  0x6a   : > { %904 = dma.done.wait (%p1432_p6), [#allocation5], 16  }
  0x6b   : > { %906 = vsyncadd (%p1432_p6), [#allocation5], 4294967280  ;;  %s1162_s1 = sand.u32 1, %s925_s13   ;;  %p1433_p3 = scmp.ne.s32.totalorder %s1425_s28, 0 }
  0x6c   : > { %s662_s8 = sshll.u32 %s1162_s1, 5  ;;  %s247_s30 = scalar_lea.sflag [#allocation3], %s1162_s1 }
  0x6d   : > { %s1166_s26 = scalar_lea.vmem [#allocation6], %s662_s8 }
  0x6e   : > { %908 = dma.done.wait (%p1433_p3), %s247_s30, 512  }
  0x6f   : > { %910 = vsyncadd (%p1433_p3), %s247_s30, 4294966784  ;;  %s697_s18 = smul.u32 96, %s1162_s1  ;;  %s256_s27 = scalar_lea.sflag [#allocation8], %s1162_s1 }
  0x71   : > { %s1174_s7 = scalar_lea.vmem [#allocation7], %s697_s18 }
  0x72   : > { %912 = dma.done.wait (%p1433_p3), %s256_s27, 1536  }
  0x73   : > { %914 = vsyncadd (%p1433_p3), %s256_s27, 4294965760 }
  0x74   : > { %264 = sfence }
  0x75   : > { %s675_s9 = sld [smem:[#allocation2 + $0x4]]  ;;  %s676_s24 = sld [smem:[#allocation2 + $0x5]]  ;;  %v1181_v0 = vld [vmem:[%s1166_s26 + $0x10] sm:$0xff]  ;;  %v1193_v4 = vld [vmem:[%s1166_s26] sm:$0xff]  ;;  %v1211_v9 = vld [vmem:[%s1166_s26 + $0x18] sm:$0xff]  ;;  %vm485_vm0 = vcmask 523264  }
  0x76   : > { %s677_s22 = sld [smem:[#allocation2 + $0x6]]  ;;  %s678_s10 = sld [smem:[#allocation2 + $0x7]]  ;;  %v1184_v1 = vld [vmem:[%s1174_s7 + $0x10] sm:$0xff]  ;;  %v1198_v5 = vld [vmem:[%s1174_s7] sm:$0xff]  ;;  %v1214_v10 = vld [vmem:[%s1174_s7 + $0x18] sm:$0xff] }
  0x77   : > { %v1187_v2 = vld [vmem:[%s1174_s7 + $0x30] sm:$0xff]  ;;  %s1195_s28 = sld [smem:[#allocation2 + $0xc]]  ;;  %v1201_v6 = vld [vmem:[%s1174_s7 + $0x20] sm:$0xff]  ;;  %s1203_s11 = sld [smem:[#allocation2 + $0xd]]  ;;  %v1219_v15 = vld [vmem:[%s1174_s7 + $0x38] sm:$0xff] }
  0x78   : > { %v1190_v3 = vld [vmem:[%s1174_s7 + $0x50] sm:$0xff]  ;;  %s1205_s20 = sld [smem:[#allocation2 + $0xe]]  ;;  %v1208_v8 = vld [vmem:[%s1174_s7 + $0x40] sm:$0xff]  ;;  %v1222_v16 = vld [vmem:[%s1174_s7 + $0x58] sm:$0xff]  ;;  %s1224_s21 = sld [smem:[#allocation2 + $0xf]] }
  0x79   : > { %v1230_v21 = vld [vmem:[%s1166_s26 + $0x8] sm:$0xff]  ;;  %s1238_s25 = sld [smem:[#allocation2]]  ;;  %s1254_s4 = sld [smem:[#allocation2 + $0x1]] }
  0x7a   : > { %v1233_v22 = vld [vmem:[%s1174_s7 + $0x8] sm:$0xff]  ;;  %s1260_s23 = sld [smem:[#allocation2 + $0x2]]  ;;  %s1262_s0 = sld [smem:[#allocation2 + $0x3]] }
  0x7b   : > { %v346_v7 = vstv %s675_s9  ;;  %v352_v12 = vstv %s676_s24  ;;  %v1236_v23 = vld [vmem:[%s1174_s7 + $0x28] sm:$0xff]  ;;  %s961_s8 = smov 64   ;;  %s1285_s30 = sld [smem:[#allocation2 + $0x8]] }
  0x7c   : > { %v349_v11 = vmul.f32 %v346_v7, %v1181_v0  ;;  %v362_v13 = vstv %s677_s22  ;;  %v347_v14 = vmul.f32 %v346_v7, %v1193_v4  ;;  %v355_v17 = vmul.f32 %v352_v12, %v1184_v1  ;;  %v1245_v28 = vld [vmem:[%s1174_s7 + $0x48] sm:$0xff]  ;;  %s1289_s26 = sld [smem:[#allocation2 + $0x9]]  ;;  %s1293_s18 = sld [smem:[#allocation2 + $0xa]] }
  0x7d   : > { %v365_v18 = vmul.f32 %v1187_v2, %v362_v13  ;;  %v372_v19 = vstv %s678_s10  ;;  %v353_v20 = vmul.f32 %v352_v12, %v1198_v5  ;;  %v363_v25 = vmul.f32 %v1201_v6, %v362_v13  ;;  %s1295_s27 = sld [smem:[#allocation2 + $0xb]]  ;;  %s663_s7 = sshll.u32 %s1162_s1, 6 }
  0x7e   : > { %v375_v24 = vmul.f32 %v1190_v3, %v372_v19  ;;  %v373_v26 = vmul.f32 %v1208_v8, %v372_v19  ;;  %v350_v27 = vmul.f32 %v346_v7, %v1211_v9  ;;  %v359_v29 = vadd.f32 %v355_v17, %v349_v11  ;;  %s287_s9 = scalar_lea.vmem [#allocation9], %s663_s7  ;;  %s694_s24 = sshll.u32 %s933_s15, 3 }
  0x7f   : > { %v357_v30 = vadd.f32 %v353_v20, %v347_v14  ;;  %v356_v31 = vmul.f32 %v352_v12, %v1214_v10  ;;  %v366_v32 = vmul.f32 %v1219_v15, %v362_v13  ;;  %v376_v33 = vmul.f32 %v1222_v16, %v372_v19  ;;  %s690_s22 = sshll.u32 %s937_s16, 4  ;;  %p1434_p9 = scmp.ne.s32.totalorder %s1426_s29, 0 }
  0x80   : > { %v348_v34 = vmul.f32 %v346_v7, %v1230_v21  ;;  %v354_v35 = vmul.f32 %v352_v12, %v1233_v22  ;;  %v364_v36 = vmul.f32 %v1236_v23, %v362_v13  ;;  %v369_v37 = vadd.f32 %v365_v18, %v359_v29  ;;  %s516_s10 = sadd.s32 %s694_s24, %s690_s22 }
  0x81   : > { %v367_v38 = vadd.f32 %v363_v25, %v357_v30  ;;  %v360_v39 = vadd.f32 %v356_v31, %v350_v27  ;;  %v374_v40 = vmul.f32 %v1245_v28, %v372_v19  ;;  %v418_v42 = vstv %s1195_s28  ;;  %s691_s28 = sshll.u32 %s516_s10, 7 }
  0x82   : > { %v358_v41 = vadd.f32 %v354_v35, %v348_v34  ;;  %v424_v43 = vstv %s1203_s11  ;;  %v434_v44 = vstv %s1205_s20  ;;  %v379_v45 = vadd.f32 %v375_v24, %v369_v37  ;;  %s519_s11 = sshll.u32 %s287_s9, 4  ;;  %s1348_s20 = scalar_lea.hbm %s1409_s3, %s691_s28  ;;  %s1350_s11 = int_to_ptr.vmem [resolvable:$true] %s519_s11 }
  0x83   : > { %v377_v46 = vadd.f32 %v373_v26, %v367_v38  ;;  %v370_v47 = vadd.f32 %v366_v32, %v360_v39  ;;  %v420_v48 = vmul.f32 %v418_v42, %v1230_v21  ;;  %v426_v50 = vmul.f32 %v424_v43, %v1233_v22 }
  0x84   : > { %v368_v49 = vadd.f32 %v364_v36, %v358_v41  ;;  %v436_v51 = vmul.f32 %v1236_v23, %v434_v44  ;;  %v444_v52 = vstv %s1224_s21  ;;  %461 = vrot.lane.b32.xlu1 %v379_v45, %s961_s8  ;;  %v419_v55 = vmul.f32 %v418_v42, %v1193_v4  ;;  %s503_s21 = scalar_lea.sflag [#allocation4], %s1162_s1 }
  0x85   : > { %457 = vrot.lane.b32.xlu0 %v377_v46, %s961_s8  ;;  %v380_v53 = vadd.f32 %v376_v33, %v370_v47  ;;  %v446_v54 = vmul.f32 %v1245_v28, %v444_v52  ;;  %v310_v56 = vstv %s1238_s25  ;;  %v430_v58 = vadd.f32 %v426_v50, %v420_v48  ;;  %s843_s25 = scalar_lea.vmem %s1350_s11, 1024 }
  0x86   : > { %v378_v57 = vadd.f32 %v374_v40, %v368_v49  ;;  %v425_v59 = vmul.f32 %v424_v43, %v1198_v5  ;;  %v435_v60 = vmul.f32 %v1201_v6, %v434_v44  ;;  %v445_v61 = vmul.f32 %v1208_v8, %v444_v52  ;;  %p844_p8 = scmp.ne.s32.totalorder %s1350_s11, %s843_s25 }
  0x87   : > { %v422_v62 = vmul.f32 %v418_v42, %v1211_v9  ;;  %v428_v63 = vmul.f32 %v424_v43, %v1214_v10  ;;  %v438_v7 = vmul.f32 %v1219_v15, %v434_v44  ;;  %v440_v11 = vadd.f32 %v436_v51, %v430_v58 }
  0x88   : > { %v429_v12 = vadd.f32 %v425_v59, %v419_v55  ;;  %v448_v13 = vmul.f32 %v1222_v16, %v444_v52  ;;  %v421_v14 = vmul.f32 %v418_v42, %v1181_v0  ;;  %463 = vrot.lane.b32.xlu1 %v380_v53, %s961_s8  ;;  %v427_v18 = vmul.f32 %v424_v43, %v1184_v1  ;;  %p845_p13 = pnand %p844_p8, %p1434_p9 }
  0x89   : > { %459 = vrot.lane.b32.xlu0 %v378_v57, %s961_s8  ;;  %v432_v17 = vadd.f32 %v428_v63, %v422_v62  ;;  %v437_v19 = vmul.f32 %v1187_v2, %v434_v44  ;;  %v316_v20 = vstv %s1254_s4  ;;  %v450_v24 = vadd.f32 %v446_v54, %v440_v11  ;;  %s962_s4 = smov [#allocation9]  }
  0x8a   : > { %v439_v25 = vadd.f32 %v435_v60, %v429_v12  ;;  %v447_v26 = vmul.f32 %v1190_v3, %v444_v52  ;;  %v319_v27 = vmul.f32 %v316_v20, %v1184_v1  ;;  %v431_v30 = vadd.f32 %v427_v18, %v421_v14  ;;  %p846_p2 = pneg %p845_p13 }
  0x8b   : > { %v442_v29 = vadd.f32 %v438_v7, %v432_v17  ;;  %v326_v31 = vstv %s1260_s23  ;;  %v336_v32 = vstv %s1262_s0  ;;  %v313_v36 = vmul.f32 %v310_v56, %v1181_v0  ;;  %s847_s23 = sshll.u32 %s962_s4, 4  ;;  %s848_s23 = int_to_ptr.vmem [resolvable:$false] %s847_s23 }
  0x8c   : > { %v449_v33 = vadd.f32 %v445_v61, %v439_v25  ;;  %v329_v34 = vmul.f32 %v1187_v2, %v326_v31  ;;  %v339_v35 = vmul.f32 %v1190_v3, %v336_v32  ;;  %475 = vrot.lane.b32.xlu1 %v450_v24, %s961_s8  ;;  %v441_v38 = vadd.f32 %v437_v19, %v431_v30  ;;  %s849_s0 = scalar_lea.vmem %s848_s23, 2048  ;;  %p850_p7 = scmp.lt.s32.totalorder %s1350_s11, %s848_s23 }
  0x8d   : > { %v452_v37 = vadd.f32 %v448_v13, %v442_v29  ;;  %v317_v39 = vmul.f32 %v316_v20, %v1198_v5  ;;  %v327_v40 = vmul.f32 %v1201_v6, %v326_v31  ;;  %v323_v41 = vadd.f32 %v319_v27, %v313_v36  ;;  %p851_p11 = scmp.lt.s32.totalorder %s849_s0, %s843_s25 }
  0x8e   : > { %473 = vrot.lane.b32.xlu0 %v449_v33, %s961_s8  ;;  %v337_v42 = vmul.f32 %v1208_v8, %v336_v32  ;;  %v311_v43 = vmul.f32 %v310_v56, %v1193_v4  ;;  %v314_v44 = vmul.f32 %v310_v56, %v1211_v9  ;;  %v451_v45 = vadd.f32 %v447_v26, %v441_v38 }
  0x8f   : > { %v320_v46 = vmul.f32 %v316_v20, %v1214_v10  ;;  %v330_v47 = vmul.f32 %v1219_v15, %v326_v31  ;;  %v340_v48 = vmul.f32 %v1222_v16, %v336_v32  ;;  %v333_v49 = vadd.f32 %v329_v34, %v323_v41  ;;  %p852_p0 = por %p851_p11, %p850_p7 }
  0x90   : > { %v321_v50 = vadd.f32 %v317_v39, %v311_v43  ;;  %v312_v51 = vmul.f32 %v310_v56, %v1230_v21  ;;  %v318_v52 = vmul.f32 %v316_v20, %v1233_v22  ;;  %479 = vrot.lane.b32.xlu1 %v452_v37, %s961_s8  ;;  %v328_v54 = vmul.f32 %v1236_v23, %v326_v31 }
  0x91   : > { %v324_v53 = vadd.f32 %v320_v46, %v314_v44  ;;  %v338_v55 = vmul.f32 %v1245_v28, %v336_v32  ;;  %v382_v57 = vstv %s1285_s30  ;;  %v343_v58 = vadd.f32 %v339_v35, %v333_v49  ;;  %p853_p1 = pnand %p852_p0, %p846_p2 }
  0x92   : > { %477 = vrot.lane.b32.xlu0 %v451_v45, %s961_s8  ;;  %v331_v59 = vadd.f32 %v327_v40, %v321_v50  ;;  %v322_v60 = vadd.f32 %v318_v52, %v312_v51  ;;  %v388_v61 = vstv %s1289_s26  ;;  %v398_v56 = vstv %s1293_s18 }
  0x93   : > { %v334_v62 = vadd.f32 %v330_v47, %v324_v53  ;;  %v390_v63 = vmul.f32 %v388_v61, %v1233_v22  ;;  %v408_v7 = vstv %s1295_s27  ;;  %v400_v13 = vmul.f32 %v1236_v23, %v398_v56 }
  0x94   : > { %v341_v11 = vadd.f32 %v337_v42, %v331_v59  ;;  %v332_v12 = vadd.f32 %v328_v54, %v322_v60  ;;  %v410_v14 = vmul.f32 %v1245_v28, %v408_v7  ;;  %v384_v18 = vmul.f32 %v382_v57, %v1230_v21 }
  0x95   : > { %v344_v17 = vadd.f32 %v340_v48, %v334_v62  ;;  %v383_v19 = vmul.f32 %v382_v57, %v1193_v4  ;;  %v389_v20 = vmul.f32 %v388_v61, %v1198_v5  ;;  %v399_v25 = vmul.f32 %v1201_v6, %v398_v56 }
  0x96   : > { %v342_v24 = vadd.f32 %v338_v55, %v332_v12  ;;  %v409_v22 = vmul.f32 %v1208_v8, %v408_v7  ;;  %v386_v26 = vmul.f32 %v382_v57, %v1211_v9  ;;  %v394_v27 = vadd.f32 %v390_v63, %v384_v18 }
  0x97   : > { %v393_v29 = vadd.f32 %v389_v20, %v383_v19  ;;  %v392_v23 = vmul.f32 %v388_v61, %v1214_v10  ;;  %v402_v28 = vmul.f32 %v1219_v15, %v398_v56  ;;  %v385_v21 = vmul.f32 %v382_v57, %v1181_v0 }
  0x98   : > { %v391_v4 = vmul.f32 %v388_v61, %v1184_v1  ;;  %v401_v5 = vmul.f32 %v1187_v2, %v398_v56  ;;  %v404_v30 = vadd.f32 %v400_v13, %v394_v27  ;;  %v412_v8 = vmul.f32 %v1222_v16, %v408_v7 }
  0x99   : > { %v403_v31 = vadd.f32 %v399_v25, %v393_v29  ;;  %v396_v6 = vadd.f32 %v392_v23, %v386_v26  ;;  %v411_v9 = vmul.f32 %v1190_v3, %v408_v7 }
  0x9a   : > { %v395_v32 = vadd.f32 %v391_v4, %v385_v21  ;;  %v414_v33 = vadd.f32 %v410_v14, %v404_v30 }
  0x9b   : > { %v413_v10 = vadd.f32 %v409_v22, %v403_v31  ;;  %v406_v15 = vadd.f32 %v402_v28, %v396_v6 }
  0x9c   : > { %v405_v34 = vadd.f32 %v401_v5, %v395_v32 }
  0x9d   : > { %v416_v35 = vadd.f32 %v412_v8, %v406_v15 }
  0x9e   : > { %v415_v0 = vadd.f32 %v411_v9, %v405_v34 }
  0xf6   : > { %v462_v1 = vpop.permute.xlu1 %461 }
  0xf7   : > { %v458_v2 = vpop.permute.xlu0 %457  ;;  %v488_v36 = vsel %vm485_vm0, %v343_v58, %v462_v1 }
  0xf8   : > { %v486_v37 = vsel %vm485_vm0, %v341_v11, %v458_v2  ;;  %498 = vst [vmem:[%s287_s9 + $0x20] sm:$0xff] %v488_v36 }
  0xf9   : > { %494 = vst [vmem:[%s287_s9] sm:$0xff] %v486_v37 }
  0xfa   : > { %v464_v3 = vpop.permute.xlu1 %463 }
  0xfb   : > { %v460_v16 = vpop.permute.xlu0 %459  ;;  %v489_v38 = vsel %vm485_vm0, %v344_v17, %v464_v3 }
  0xfc   : > { %v487_v39 = vsel %vm485_vm0, %v342_v24, %v460_v16  ;;  %500 = vst [vmem:[%s287_s9 + $0x30] sm:$0xff] %v489_v38 }
  0xfd   : > { %496 = vst [vmem:[%s287_s9 + $0x10] sm:$0xff] %v487_v39 }
  0xfe   : > { %v476_v40 = vpop.permute.xlu1 %475 }
  0xff   : > { %v491_v41 = vsel %vm485_vm0, %v414_v33, %v476_v40 }
 0x100   : > { %v474_v42 = vpop.permute.xlu0 %473  ;;  %497 = vst [vmem:[%s287_s9 + $0x18] sm:$0xff] %v491_v41 }
 0x101   : > { %v490_v43 = vsel %vm485_vm0, %v413_v10, %v474_v42 }
 0x102   : > { %495 = vst [vmem:[%s287_s9 + $0x8] sm:$0xff] %v490_v43  ;;  %v480_v44 = vpop.permute.xlu1 %479 }
 0x103   : > { %v493_v45 = vsel %vm485_vm0, %v416_v35, %v480_v44 }
 0x104   : > { %v478_v46 = vpop.permute.xlu0 %477  ;;  %501 = vst [vmem:[%s287_s9 + $0x38] sm:$0xff] %v493_v45 }
 0x105   : > { %v492_v47 = vsel %vm485_vm0, %v415_v0, %v478_v46 }
 0x106   : > { %499 = vst [vmem:[%s287_s9 + $0x28] sm:$0xff] %v492_v47 }
 0x107   : > { %856 = shalt.err (!%p853_p1)
}
 0x108   : > { %s857_s8 = scalar_lea.hbm %s1348_s20, 1024  ;;  %s861_s18 = scalar_lea.hbm %s1409_s3, 4096 }
 0x109   : > { %p858_p4 = scmp.ne.s32.totalorder %s1348_s20, %s857_s8  ;;  %p862_p12 = scmp.lt.u32.totalorder %s1348_s20, %s1409_s3 }
 0x10a   : > { %p863_p6 = scmp.lt.u32.totalorder %s861_s18, %s857_s8  ;;  %p865_p8 = scmp.lt.u32.totalorder %s857_s8, %s1348_s20 }
 0x10b   : > { %p859_p5 = pnand %p858_p4, %p1434_p9 }
 0x10c   : > { %p864_p3 = por %p863_p6, %p862_p12 }
 0x10d   : > { %p860_p10 = pneg %p859_p5 }
 0x10e   : > { %p866_p13 = por %p865_p8, %p864_p3 }
 0x110   : > { %p867_p2 = pnand %p866_p13, %p860_p10 }
 0x112   : > { %870 = shalt.err (!%p867_p2)
}
 0x113   : > { %s963_s9 = smov 256   ;;  %s964_s24 = smov 16  }
 0x114   : > { %713 = dma.vmem_to_hbm [thread:$0]  (%p1434_p9), %s1350_s11, 1024, %s1348_s20, %s503_s21, %s963_s9, %s963_s9, %s964_s24  }
 0x115 PF: > { %p725_p7 = scmp.ge.s32.totalorder %s949_s19, 2  ;;  %s534_s22 = sand.u32 1, %s921_s12  }
 0x116   : > { %p1435_p11 = scmp.ne.s32.totalorder %s1427_s5, 0  ;;  %s535_s10 = scalar_lea.sflag [#allocation4], %s534_s22 }
 0x118   : > { %p720_p0 = pnand %p725_p7, %p1435_p11 }
 0x11a   : > { %916 = dma.done.wait (!%p720_p0), %s535_s10, 1024  }
 0x11b   : > { %918 = vsyncadd (!%p720_p0), %s535_s10, 4294966272  ;;  %s23_s19 = sadd.s32 1, %s949_s19   ;;  %s1436_s16 = sld [smem:[#allocation17_spill]] }
 0x11c   : > { %p20_p1 = scmp.ge.s32.totalorder %s23_s19, 6   ;;  %s1437_s29 = sld [smem:[#allocation18_spill]] }
 0x11d   : > { %s1438_s18 = sld [smem:[#allocation19_spill]]  ;;  %s1439_s12 = smov %s925_s13 }
 0x11e   : > { %s1440_s13 = smov %s929_s14  ;;  %s1441_s14 = smov %s1069_s6 }
 0x11f   : > { %s1442_s15 = smov %s941_s17  ;;  %22 = sbr.rel (!%p20_p1) target bundleno = 13 (0xd), region = 102 }
 0x122   : > { %s1443_s17 = smov %s1437_s29 }
 0x126   :  { %540 = vsyncpa [#allocation3], 1 }
 0x127   :  { %542 = vsyncpa [#allocation3 + $0x1], 1 }
 0x128   :  { %543 = vsyncpa [#allocation8], 1 }
 0x129   :  { %545 = vsyncpa [#allocation8 + $0x1], 1 }
 0x12a   :  { %546 = vsyncpa [#allocation4], 1 }
 0x12b   :  { %548 = vsyncpa [#allocation4 + $0x1], 1 }
 0x12c   :  { %549 = vsyncpa [#allocation5], 1 }
 0x12d   :  { %551 = vsyncpa [#allocation5 + $0x1], 1 }

</bundles_post_ra>
